<compile_context>
chip_gen: v7x
topology: tpu7x:2x2x1
jax: 0.10.0
libtpu: 0.0.40
codegen_flags: <defaults>
</compile_context>

<pallas_src>
import functools

import jax
import jax.numpy as jnp
from jax.experimental import pallas as pl
from jax.experimental.pallas import tpu as pltpu

EPS = 1e-5  # nn.LayerNorm default


def _round_up(a: int, b: int) -> int:
    return (a + b - 1) // b * b


def _linear_layer_kernel(x_ref, gamma_ref, beta_ref, w_ref, b_ref, o_ref):
    # x_ref: (TM, D_in) row tile; w_ref: (D_in, TN) bf16 weight tile; o_ref: (TM, TN)
    x = x_ref[...].astype(jnp.float32)

    # LayerNorm over the full last dim (biased variance, eps=1e-5, elementwise affine), f32 math.
    mean = jnp.mean(x, axis=-1, keepdims=True)
    centered = x - mean
    var = jnp.mean(centered * centered, axis=-1, keepdims=True)
    x_norm = centered * jax.lax.rsqrt(var + EPS)
    y = x_norm * gamma_ref[...].astype(jnp.float32) + beta_ref[...].astype(jnp.float32)

    # Dropout: eval-mode identity (inference).
    # TODO(synk): training-mode dropout with hardware PRNG (pltpu.prng_random_bits) not implemented.

    # Linear: bf16 x bf16 MXU matmul with f32 accumulation, then bias + ReLU.
    acc = jnp.dot(y.astype(jnp.bfloat16), w_ref[...],
                  preferred_element_type=jnp.float32)
    acc = acc + b_ref[...].astype(jnp.float32)
    o_ref[...] = jnp.maximum(acc, 0.0).astype(o_ref.dtype)


@functools.partial(jax.jit, static_argnames=("tile_m", "tile_n"))
def linear_layer(x, gamma, beta, weight, bias, *, tile_m=512, tile_n=512):
    """x: (N, L, D_in); weight: (D_in, D_out); bias: (D_out,); returns (N, L, D_out)."""
    N, L, D_in = x.shape
    D_out = weight.shape[1]
    M = N * L

    # Adaptive tiles: big for large problems, shrunk (to the HW-aligned minimum) for tiny ones.
    tile_m = min(tile_m, _round_up(M, 8))
    tile_n = min(tile_n, _round_up(D_out, 128))

    M_pad = _round_up(M, tile_m)
    Dout_pad = _round_up(D_out, tile_n)

    x2d = x.reshape(M, D_in)
    if M_pad != M:
        x2d = jnp.pad(x2d, ((0, M_pad - M), (0, 0)))

    gamma2d = gamma.reshape(1, D_in)
    beta2d = beta.reshape(1, D_in)

    # Weight pre-cast to bf16 once (halves its per-step DMA, feeds the MXU's fast path);
    # D_out padded so output tiles are lane-dense (unmasked vst).
    w_bf16 = weight.astype(jnp.bfloat16)
    bias2d = bias.reshape(1, D_out).astype(jnp.float32)
    if Dout_pad != D_out:
        w_bf16 = jnp.pad(w_bf16, ((0, 0), (0, Dout_pad - D_out)))
        bias2d = jnp.pad(bias2d, ((0, 0), (0, Dout_pad - D_out)))

    grid = (M_pad // tile_m, Dout_pad // tile_n)

    out2d = pl.pallas_call(
        _linear_layer_kernel,
        out_shape=jax.ShapeDtypeStruct((M_pad, Dout_pad), x.dtype),
        grid_spec=pltpu.PrefetchScalarGridSpec(
            num_scalar_prefetch=0,
            grid=grid,
            in_specs=[
                pl.BlockSpec((tile_m, D_in), lambda i, j: (i, 0)),    # x row tile (re-used across j)
                pl.BlockSpec((1, D_in), lambda i, j: (0, 0)),         # LayerNorm gamma (constant)
                pl.BlockSpec((1, D_in), lambda i, j: (0, 0)),         # LayerNorm beta (constant)
                pl.BlockSpec((D_in, tile_n), lambda i, j: (0, j)),    # weight column tile (bf16)
                pl.BlockSpec((1, tile_n), lambda i, j: (0, j)),       # bias tile
            ],
            out_specs=pl.BlockSpec((tile_m, tile_n), lambda i, j: (i, j)),
        ),
        compiler_params=pltpu.CompilerParams(
            dimension_semantics=("parallel", "parallel"),
            vmem_limit_bytes=64 * 1024 * 1024,
        ),
    )(x2d, gamma2d, beta2d, w_bf16, bias2d)

    return out2d[:M, :D_out].reshape(N, L, D_out)


def _reference(x, gamma, beta, weight, bias):
    xf = x.astype(jnp.float32)
    mean = jnp.mean(xf, axis=-1, keepdims=True)
    var = jnp.mean((xf - mean) ** 2, axis=-1, keepdims=True)
    xn = (xf - mean) / jnp.sqrt(var + EPS)
    y = xn * gamma + beta
    out = y @ weight.astype(jnp.float32) + bias
    return jnp.maximum(out, 0.0).astype(x.dtype)


if __name__ == "__main__":
    key = jax.random.PRNGKey(0)
    N, L, D_in, D_out = 2, 8, 32, 32

    k1, k2, k3 = jax.random.split(key, 3)
    x = jax.random.normal(k1, (N, L, D_in), dtype=jnp.float32)

    # Deterministic parameter init (synthetic; mirrors module shapes).
    gamma = jnp.ones((D_in,), jnp.float32)
    beta = jnp.zeros((D_in,), jnp.float32)
    # nn.Linear(input_dim, output_dim): weight (D_out, D_in); stored transposed (D_in, D_out).
    bound = 1.0 / (D_in ** 0.5)
    weight = jax.random.uniform(k2, (D_in, D_out), jnp.float32, -bound, bound)
    bias = jax.random.uniform(k3, (D_out,), jnp.float32, -bound, bound)

    out = linear_layer(x, gamma, beta, weight, bias)
    out = jax.block_until_ready(out)

    ref = _reference(x, gamma, beta, weight, bias)
    assert out.shape == (N, L, D_out)
    # bf16 MXU operands (f32 accumulation) vs. pure-f32 reference -> loosened tolerance.
    assert jnp.allclose(out, ref, atol=2e-2, rtol=2e-2), "mismatch vs reference"

    print("KERNEL_OK")
</pallas_src>

<mosaic_0001>
module attributes {stable_mosaic.version = 11 : i64} {
  func.func @_linear_layer_kernel(%arg0: i32, %arg1: i32, %arg2: memref<16x32xf32, #tpu.memory_space<vmem>>, %arg3: memref<1x32xf32, #tpu.memory_space<vmem>>, %arg4: memref<1x32xf32, #tpu.memory_space<vmem>>, %arg5: memref<32x128xbf16, #tpu.memory_space<vmem>>, %arg6: memref<1x128xf32, #tpu.memory_space<vmem>>, %arg7: memref<16x128xf32, #tpu.memory_space<vmem>>) attributes {dimension_semantics = [#tpu.dimension_semantics<parallel>, #tpu.dimension_semantics<parallel>], iteration_bounds = array<i64: 1, 1>, scalar_prefetch = 0 : i64, scratch_operands = 0 : i64, tpu.core_type = #tpu.core_type<tc>, window_params = [{transform_indices = @transform_0, window_bounds = array<i64: 16, 32>}, {pipeline_mode = #tpu.pipeline_mode<synchronous>, transform_indices = @transform_1, window_bounds = array<i64: 1, 32>}, {pipeline_mode = #tpu.pipeline_mode<synchronous>, transform_indices = @transform_2, window_bounds = array<i64: 1, 32>}, {transform_indices = @transform_3, window_bounds = array<i64: 32, 128>}, {transform_indices = @transform_4, window_bounds = array<i64: 1, 128>}, {transform_indices = @transform_5, window_bounds = array<i64: 16, 128>}]} {
    %c0 = arith.constant 0 : index
    %c0_0 = arith.constant 0 : index
    %0 = vector.load %arg2[%c0, %c0_0] : memref<16x32xf32, #tpu.memory_space<vmem>>, vector<16x32xf32>
    %cst = arith.constant dense<0.000000e+00> : vector<16xf32>
    %1 = vector.multi_reduction <add>, %0, %cst [1] : vector<16x32xf32> to vector<16xf32>
    %2 = vector.shape_cast %1 : vector<16xf32> to vector<16x1xf32>
    %cst_1 = arith.constant 3.200000e+01 : f32
    %3 = vector.broadcast %cst_1 : f32 to vector<16x1xf32>
    %4 = arith.divf %2, %3 : vector<16x1xf32>
    %5 = vector.broadcast %4 : vector<16x1xf32> to vector<16x32xf32>
    %6 = arith.subf %0, %5 : vector<16x32xf32>
    %7 = arith.mulf %6, %6 : vector<16x32xf32>
    %cst_2 = arith.constant dense<0.000000e+00> : vector<16xf32>
    %8 = vector.multi_reduction <add>, %7, %cst_2 [1] : vector<16x32xf32> to vector<16xf32>
    %9 = vector.shape_cast %8 : vector<16xf32> to vector<16x1xf32>
    %cst_3 = arith.constant 3.200000e+01 : f32
    %10 = vector.broadcast %cst_3 : f32 to vector<16x1xf32>
    %11 = arith.divf %9, %10 : vector<16x1xf32>
    %cst_4 = arith.constant 9.99999974E-6 : f32
    %12 = vector.broadcast %cst_4 : f32 to vector<16x1xf32>
    %13 = arith.addf %11, %12 : vector<16x1xf32>
    %14 = math.rsqrt %13 : vector<16x1xf32>
    %15 = vector.broadcast %14 : vector<16x1xf32> to vector<16x32xf32>
    %16 = arith.mulf %6, %15 : vector<16x32xf32>
    %c0_5 = arith.constant 0 : index
    %c0_6 = arith.constant 0 : index
    %17 = vector.load %arg3[%c0_5, %c0_6] : memref<1x32xf32, #tpu.memory_space<vmem>>, vector<1x32xf32>
    %18 = vector.broadcast %17 : vector<1x32xf32> to vector<16x32xf32>
    %19 = arith.mulf %16, %18 : vector<16x32xf32>
    %c0_7 = arith.constant 0 : index
    %c0_8 = arith.constant 0 : index
    %20 = vector.load %arg4[%c0_7, %c0_8] : memref<1x32xf32, #tpu.memory_space<vmem>>, vector<1x32xf32>
    %21 = vector.broadcast %20 : vector<1x32xf32> to vector<16x32xf32>
    %22 = arith.addf %19, %21 : vector<16x32xf32>
    %23 = arith.truncf %22 : vector<16x32xf32> to vector<16x32xbf16>
    %c0_9 = arith.constant 0 : index
    %c0_10 = arith.constant 0 : index
    %24 = vector.load %arg5[%c0_9, %c0_10] : memref<32x128xbf16, #tpu.memory_space<vmem>>, vector<32x128xbf16>
    %cst_11 = arith.constant dense<0.000000e+00> : vector<16x128xf32>
    %25 = tpu.matmul %23, %24, %cst_11 {dimension_numbers = #tpu.dot_dimension_numbers<[1], [0], [0], [1], [0, 0, 1, 1], [], []>} : vector<16x32xbf16>, vector<32x128xbf16>, vector<16x128xf32> -> vector<16x128xf32>
    %c0_12 = arith.constant 0 : index
    %c0_13 = arith.constant 0 : index
    %26 = vector.load %arg6[%c0_12, %c0_13] : memref<1x128xf32, #tpu.memory_space<vmem>>, vector<1x128xf32>
    %27 = vector.broadcast %26 : vector<1x128xf32> to vector<16x128xf32>
    %28 = arith.addf %25, %27 : vector<16x128xf32>
    %cst_14 = arith.constant 0.000000e+00 : f32
    %29 = vector.broadcast %cst_14 : f32 to vector<16x128xf32>
    %30 = arith.maximumf %28, %29 : vector<16x128xf32>
    %c0_15 = arith.constant 0 : index
    %c0_16 = arith.constant 0 : index
    %31 = vector.load %arg7[%c0_15, %c0_16] : memref<16x128xf32, #tpu.memory_space<vmem>>, vector<16x128xf32>
    tpu.vector_store %arg7[%c0_15, %c0_16], %30 {strides = array<i32>} : memref<16x128xf32, #tpu.memory_space<vmem>>, vector<16x128xf32>,
    return
  }
  func.func @transform_0(%arg0: i32, %arg1: i32) -> (i32, i32) {
    %c0_i32 = arith.constant 0 : i32
    %c0_i32_0 = arith.constant 0 : i32
    return %arg0, %c0_i32 : i32, i32
  }
  func.func @transform_1(%arg0: i32, %arg1: i32) -> (i32, i32) {
    %c0_i32 = arith.constant 0 : i32
    %c0_i32_0 = arith.constant 0 : i32
    %c0_i32_1 = arith.constant 0 : i32
    return %c0_i32, %c0_i32_0 : i32, i32
  }
  func.func @transform_2(%arg0: i32, %arg1: i32) -> (i32, i32) {
    %c0_i32 = arith.constant 0 : i32
    %c0_i32_0 = arith.constant 0 : i32
    %c0_i32_1 = arith.constant 0 : i32
    return %c0_i32, %c0_i32_0 : i32, i32
  }
  func.func @transform_3(%arg0: i32, %arg1: i32) -> (i32, i32) {
    %c0_i32 = arith.constant 0 : i32
    %c0_i32_0 = arith.constant 0 : i32
    return %c0_i32, %arg1 : i32, i32
  }
  func.func @transform_4(%arg0: i32, %arg1: i32) -> (i32, i32) {
    %c0_i32 = arith.constant 0 : i32
    %c0_i32_0 = arith.constant 0 : i32
    return %c0_i32, %arg1 : i32, i32
  }
  func.func @transform_5(%arg0: i32, %arg1: i32) -> (i32, i32) {
    %c0_i32 = arith.constant 0 : i32
    return %arg0, %arg1 : i32, i32
  }
}

</mosaic_0001>

<bundles_post_ra>
// kernel: linear_layer.1
= control target key start
LH: loop header
LB: loop body
LE: loop exit
PB: predicated region body
PF: predicated region fallthrough
CT: control target
= control target key end

     0   :  { %10 = vsyncpa [#allocation3], 0  ;;  %s530_s0 = inlined_call_operand.hbm [shape: f32[16,32], index: 0, kind: input, shape index: {}]   ;;  %s531_s1 = inlined_call_operand.hbm [shape: f32[1,32], index: 1, kind: input, shape index: {}]   ;;  %s532_s2 = inlined_call_operand.hbm [shape: f32[1,32], index: 2, kind: input, shape index: {}]   ;;  %s533_s3 = inlined_call_operand.hbm [shape: bf16[32,128], index: 3, kind: input, shape index: {}]   ;;  %s534_s4 = inlined_call_operand.hbm [shape: f32[1,128], index: 4, kind: input, shape index: {}]   ;;  %s535_s5 = inlined_call_operand.hbm [shape: f32[16,128], index: 5, kind: output, shape index: {}]  }
   0x1   :  { %11 = vsyncpa [#allocation6], 0 }
   0x2   :  { %12 = vsyncpa [#allocation9], 0 }
   0x3   :  { %13 = vsyncpa [#allocation4], 0  ;;  %s398_s18 = smov [#allocation5]   ;;  %s399_s20 = smov [#allocation8]  }
   0x4   :  { %s32_s19 = sshll.u32 %s398_s18, 4  ;;  %s51_s21 = sshll.u32 %s399_s20, 4  ;;  %s33_s19 = int_to_ptr.vmem [resolvable:$true] %s32_s19  ;;  %s440_s21 = int_to_ptr.vmem [resolvable:$true] %s51_s21 }
   0x5   :  { %s258_s24 = scalar_lea.hbm %s531_s1, 16 }
   0x6   :  { %p259_p0 = scmp.ne.s32.totalorder %s531_s1, %s258_s24  ;;  %p262_p1 = scmp.lt.u32.totalorder %s258_s24, %s531_s1 }
   0x8   :  { %p264_p2 = pnand %p262_p1, %p259_p0 }
   0xa   :  { %267 = shalt.err (!%p264_p2)
}
   0xb   :  { %s268_s29 = scalar_lea.vmem %s33_s19, 16  ;;  %s272_s30 = scalar_lea.vmem %s33_s19, 32 }
   0xc   :  { %p269_p3 = scmp.ne.s32.totalorder %s33_s19, %s268_s29  ;;  %p273_p4 = scmp.lt.s32.totalorder %s33_s19, %s33_s19 }
   0xd   :  { %p274_p5 = scmp.lt.s32.totalorder %s272_s30, %s268_s29 }
   0xf   :  { %p275_p6 = por %p274_p5, %p273_p4 }
  0x11   :  { %p276_p7 = pnand %p275_p6, %p269_p3 }
  0x13   :  { %279 = shalt.err (!%p276_p7)
}
  0x14   :  { %35 = dma.hbm_to_vmem [thread:$0]  %s531_s1, 16, %s33_s19, [#allocation6]  }
  0x15   :  { %s280_s10 = scalar_lea.hbm %s533_s3, 256 }
  0x16   :  { %p281_p8 = scmp.ne.s32.totalorder %s533_s3, %s280_s10  ;;  %p284_p9 = scmp.lt.u32.totalorder %s280_s10, %s533_s3 }
  0x18   :  { %p286_p10 = pnand %p284_p9, %p281_p8 }
  0x1a   :  { %289 = shalt.err (!%p286_p10)
}
  0x1b   :  { %s290_s15 = scalar_lea.vmem %s440_s21, 256  ;;  %p295_p12 = scmp.lt.s32.totalorder %s440_s21, %s440_s21 }
  0x1c   :  { %p291_p11 = scmp.ne.s32.totalorder %s440_s21, %s290_s15  ;;  %p296_p13 = scmp.lt.s32.totalorder %s290_s15, %s290_s15 }
  0x1e   :  { %p297_p0 = por %p296_p13, %p295_p12 }
  0x20   :  { %p298_p1 = pnand %p297_p0, %p291_p11 }
  0x22   :  { %301 = shalt.err (!%p298_p1)
}
  0x23   :  { %s400_s1 = smov 64   ;;  %s401_s16 = smov 4  }
  0x24   :  { %57 = dma.hbm_to_vmem [thread:$0]  %s533_s3, 256, %s440_s21, [#allocation9], %s400_s1, %s400_s1, %s401_s16  }
  0x25   :  { %s402_s19 = smov [#allocation2]   ;;  %s302_s24 = scalar_lea.hbm %s530_s0, 256 }
  0x26   :  { %s19_s20 = sshll.u32 %s402_s19, 4  ;;  %p303_p2 = scmp.ne.s32.totalorder %s530_s0, %s302_s24  ;;  %s20_s20 = int_to_ptr.vmem [resolvable:$true] %s19_s20 }
  0x27   :  { %p306_p3 = scmp.lt.u32.totalorder %s302_s24, %s530_s0 }
  0x29   :  { %p308_p4 = pnand %p306_p3, %p303_p2 }
  0x2b   :  { %311 = shalt.err (!%p308_p4)
}
  0x2c   :  { %s312_s29 = scalar_lea.vmem %s20_s20, 256  ;;  %p317_p6 = scmp.lt.s32.totalorder %s20_s20, %s20_s20 }
  0x2d   :  { %p313_p5 = scmp.ne.s32.totalorder %s20_s20, %s312_s29  ;;  %p318_p7 = scmp.lt.s32.totalorder %s312_s29, %s312_s29 }
  0x2f   :  { %p319_p8 = por %p318_p7, %p317_p6 }
  0x31   :  { %p320_p9 = pnand %p319_p8, %p313_p5 }
  0x33   :  { %323 = shalt.err (!%p320_p9)
}
  0x34   :  { %s403_s3 = smov 128   ;;  %s404_s21 = smov 8  }
  0x35   :  { %25 = dma.hbm_to_vmem [thread:$0]  %s530_s0, 256, %s20_s20, [#allocation3], %s403_s3, %s403_s3, %s404_s21  }
  0x36   :  { %s405_s7 = smov [#allocation7]   ;;  %s406_s9 = smov [#allocation10]  }
  0x37   :  { %s42_s8 = sshll.u32 %s405_s7, 4  ;;  %s64_s10 = sshll.u32 %s406_s9, 4  ;;  %s43_s8 = int_to_ptr.vmem [resolvable:$true] %s42_s8  ;;  %s65_s10 = int_to_ptr.vmem [resolvable:$true] %s64_s10 }
  0x38   :  { %s324_s13 = scalar_lea.hbm %s532_s2, 16 }
  0x39   :  { %p325_p10 = scmp.ne.s32.totalorder %s532_s2, %s324_s13  ;;  %p328_p11 = scmp.lt.u32.totalorder %s324_s13, %s532_s2 }
  0x3b   :  { %p330_p12 = pnand %p328_p11, %p325_p10 }
  0x3d   :  { %333 = shalt.err (!%p330_p12)
}
  0x3e   :  { %s334_s0 = scalar_lea.vmem %s43_s8, 16  ;;  %s338_s17 = scalar_lea.vmem %s43_s8, 32 }
  0x3f   :  { %p335_p13 = scmp.ne.s32.totalorder %s43_s8, %s334_s0  ;;  %p339_p0 = scmp.lt.s32.totalorder %s43_s8, %s43_s8 }
  0x40   :  { %p340_p1 = scmp.lt.s32.totalorder %s338_s17, %s334_s0 }
  0x42   :  { %p341_p2 = por %p340_p1, %p339_p0 }
  0x44   :  { %p342_p3 = pnand %p341_p2, %p335_p13 }
  0x46   :  { %345 = shalt.err (!%p342_p3)
}
  0x47   :  { %45 = dma.hbm_to_vmem [thread:$0]  %s532_s2, 16, %s43_s8, [#allocation6]  }
  0x48   :  { %s346_s23 = scalar_lea.hbm %s534_s4, 16 }
  0x49   :  { %p347_p4 = scmp.ne.s32.totalorder %s534_s4, %s346_s23  ;;  %p350_p5 = scmp.lt.u32.totalorder %s346_s23, %s534_s4 }
  0x4b   :  { %p352_p6 = pnand %p350_p5, %p347_p4 }
  0x4d   :  { %355 = shalt.err (!%p352_p6)
}
  0x4e   :  { %s356_s28 = scalar_lea.vmem %s65_s10, 16  ;;  %s360_s29 = scalar_lea.vmem %s65_s10, 32 }
  0x4f   :  { %p357_p7 = scmp.ne.s32.totalorder %s65_s10, %s356_s28  ;;  %p361_p8 = scmp.lt.s32.totalorder %s65_s10, %s65_s10 }
  0x50   :  { %p362_p9 = scmp.lt.s32.totalorder %s360_s29, %s356_s28 }
  0x52   :  { %p363_p10 = por %p362_p9, %p361_p8 }
  0x54   :  { %p364_p11 = pnand %p363_p10, %p357_p7 }
  0x56   :  { %367 = shalt.err (!%p364_p11)
}
  0x57   :  { %67 = dma.hbm_to_vmem [thread:$0]  %s534_s4, 16, %s65_s10, [#allocation9]  }
  0x58   :  { %390 = dma.done.wait [#allocation3], 256  }
  0x59   :  { %391 = vsyncadd [#allocation3], 4294967040 }
  0x5a   :  { %392 = dma.done.wait [#allocation6], 32  }
  0x5b   :  { %393 = vsyncadd [#allocation6], 4294967264 }
  0x5c   :  { %394 = dma.done.wait [#allocation9], 272  }
  0x5d   :  { %395 = vsyncadd [#allocation9], 4294967024  ;;  %vm86_vm0 = vcmask 261120   ;;  %v84_v0 = vld [vmem:[#allocation2] sm:$0xff]  ;;  %v85_v1 = vld [vmem:[#allocation2 + $0x8] sm:$0xff]  ;;  %v407_v15 = vmov 0.0  }
  0x5e   :  { %v87_v2 = vsel %vm86_vm0, %v84_v0, 0.0  ;;  %v90_v3 = vsel %vm86_vm0, %v85_v1, 0.0  ;;  %v252_v14 = vld [vmem:[#allocation8] sm:$0xff]   ;;  %232 = vmatprep.subr.bf16.mxu0 %v407_v15  ;;  %v253_v16 = vld [vmem:[#allocation8 + $0x8] sm:$0xff]   ;;  %vm408_vm1 = vmmov 0   ;;  %s409_s4 = smov [#allocation11]  }
  0x5f   :  { %88 = vadd.xlane.f32.xlu0 %v87_v2  ;;  %233 = vmatpush3.bf16.msra.mxu0 %v252_v14  ;;  %v223_v25 = vld [vmem:[#allocation5] ss:$0 sm:$0xff]  ;;  %v224_v29 = vld [vmem:[#allocation7] ss:$0 sm:$0xff]  ;;  %v225_v34 = vld [vmem:[#allocation10] ss:$0 sm:$0xff] }
  0x60   :  { %236 = vmatprep.mubr.msk.bf16.mxu0 %vm408_vm1, %v407_v15  ;;  %234 = vmatprep.subr.bf16.mxu0 %v407_v15  ;;  %s209_s6 = sshll.u32 %s409_s4, 4  ;;  %s210_s6 = int_to_ptr.vmem [resolvable:$true] %s209_s6 }
  0x61   :  { %s368_s7 = scalar_lea.vmem %s210_s6, 256  ;;  %p373_p13 = scmp.lt.s32.totalorder %s210_s6, %s210_s6 }
  0x62   :  { %p369_p12 = scmp.ne.s32.totalorder %s210_s6, %s368_s7  ;;  %p374_p0 = scmp.lt.s32.totalorder %s368_s7, %s368_s7 }
  0x63   :  { %91 = vadd.xlane.f32.xlu0 %v90_v3  ;;  %235 = vmatpush3.bf16.msra.mxu0 %v253_v16 }
  0x64   :  { %p375_p1 = por %p374_p0, %p373_p13 }
  0x66   :  { %p376_p2 = pnand %p375_p1, %p369_p12 }
  0xec   :  { %v89_v4 = vpop.xlane.xlu0 %88 }
  0xed   :  { %v94_v5 = vmul.f32 0.03125, %v89_v4 }
  0xef   :  { %v96_v6 = vsub.f32 %v84_v0, %v94_v5 }
  0xf0   :  { %v92_v7 = vpop.xlane.xlu0 %91 }
  0xf1   :  { %v95_v8 = vmul.f32 0.03125, %v92_v7  ;;  %v98_v9 = vmul.f32 %v96_v6, %v96_v6 }
  0xf3   :  { %v97_v10 = vsub.f32 %v85_v1, %v95_v8  ;;  %v100_v11 = vsel %vm86_vm0, %v98_v9, 0.0 }
  0xf4   :  { %101 = vadd.xlane.f32.xlu1 %v100_v11 }
  0xf5   :  { %v99_v12 = vmul.f32 %v97_v10, %v97_v10 }
  0xf7   :  { %v103_v13 = vsel %vm86_vm0, %v99_v12, 0.0 }
  0xf8   :  { %104 = vadd.xlane.f32.xlu1 %v103_v13 }
 0x181   :  { %v102_v17 = vpop.xlane.xlu1 %101 }
 0x182   :  { %v106_v18 = vmul.f32 0.03125, %v102_v17 }
 0x184   :  { %v108_v19 = vadd.f32 1e-05, %v106_v18 }
 0x185   :  { %v105_v20 = vpop.xlane.xlu1 %104 }
 0x186   :  { %254 = vrsqrt.f32 %v108_v19  ;;  %v107_v21 = vmul.f32 0.03125, %v105_v20 }
 0x188   :  { %v109_v22 = vadd.f32 1e-05, %v107_v21 }
 0x18a   :  { %256 = vrsqrt.f32 %v109_v22 }
 0x190   :  { %v255_v23 = vpop.eup %254 }
 0x191   :  { %v112_v24 = vmul.f32 %v255_v23, %v96_v6 }
 0x193   :  { %v121_v28 = vmul.f32 %v223_v25, %v112_v24 }
 0x194   :  { %v257_v26 = vpop.eup %256 }
 0x195   :  { %v113_v27 = vmul.f32 %v257_v26, %v97_v10  ;;  %v130_v31 = vadd.f32 %v224_v29, %v121_v28 }
 0x197   :  { %v122_v30 = vmul.f32 %v223_v25, %v113_v27 }
 0x199   :  { %v131_v32 = vadd.f32 %v224_v29, %v122_v30 }
 0x19b   :  { %v132_v33 = vpack.c.bf16 %v131_v32, %v130_v31 }
 0x19d   :  { %237 = vmatmul.mubr.msk.bf16.vlgmr.msra.gmra.mrb[0].mxu0 %vm86_vm0, %v132_v33 }
 0x270   :  { %v193_v35 = vpop.f32.mrb[0].mxu0 }
 0x271   :  { %v194_v36 = vadd.f32 %v225_v34, %v193_v35  ;;  %v238_v37 = vpop.f32.mrb[1].mxu0 }
 0x272   :  { %v196_v38 = vpop.f32.mrb[2].mxu0 }
 0x273   :  { %v200_v39 = vmax.f32 %v194_v36, 0.0  ;;  %v197_v40 = vadd.f32 %v225_v34, %v196_v38  ;;  %v239_v41 = vpop.f32.mrb[3].mxu0 }
 0x275   :  { %202 = vst [vmem:[#allocation11] sm:$0xff] %v200_v39  ;;  %v201_v42 = vmax.f32 %v197_v40, 0.0 }
 0x277   :  { %203 = vst [vmem:[#allocation11 + $0x8] sm:$0xff] %v201_v42 }
 0x278   :  { %379 = shalt.err (!%p376_p2)
}
 0x279   :  { %s380_s10 = scalar_lea.hbm %s535_s5, 256 }
 0x27a   :  { %p381_p3 = scmp.ne.s32.totalorder %s535_s5, %s380_s10  ;;  %p384_p4 = scmp.lt.u32.totalorder %s380_s10, %s535_s5 }
 0x27c   :  { %p386_p5 = pnand %p384_p4, %p381_p3 }
 0x27e   :  { %389 = shalt.err (!%p386_p5)
}
 0x27f   :  { %215 = dma.vmem_to_hbm [thread:$0]  %s210_s6, 256, %s535_s5, [#allocation4], %s403_s3, %s403_s3, %s404_s21  }
 0x280   :  { %396 = dma.done.wait [#allocation4], 256  }
 0x281   :  { %397 = vsyncadd [#allocation4], 4294967040 }
 0x282   :  { %219 = vsyncpa [#allocation3], 1 }
 0x283   :  { %220 = vsyncpa [#allocation6], 1 }
 0x284   :  { %221 = vsyncpa [#allocation9], 1 }
 0x285   :  { %222 = vsyncpa [#allocation4], 1 }

</bundles_post_ra>
